<compile_context>
chip_gen: v5e
topology: v5e:2x2
jax: 0.10.0
libtpu: 0.0.40
codegen_flags: <defaults>
</compile_context>

<pallas_src>
import jax
import jax.numpy as jnp
from jax.experimental import pallas as pl
from jax.experimental.pallas import tpu as pltpu


def cbam_kernel(wsp_ref, x_ref, w1t_ref, w2t_ref, o_ref):
    # x_ref: (Bb, C, L) tile (Bb batch elements per grid step).
    x = x_ref[...].astype(jnp.float32)                     # (Bb, C, L)
    Bb, C, L = x.shape
    inv_L = 1.0 / L                                        # Python consts -> VPU mul
    inv_C = 1.0 / C

    # ---- channel attention: AdaptiveMaxPool1d(1) / AdaptiveAvgPool1d(1) + shared MLP ----
    mx = jnp.max(x, axis=2)                                # (Bb, C)  C on lanes
    av = jnp.sum(x, axis=2) * inv_L                        # (Bb, C)
    pooled = jnp.concatenate([mx, av], axis=0)             # (2*Bb, C) sublane-stacked, lane-dense

    hid = jnp.dot(pooled, w1t_ref[...],
                  preferred_element_type=jnp.float32)      # (2*Bb, Cr)
    hid = jnp.maximum(hid, 0.0)                            # ReLU
    mlp_out = jnp.dot(hid, w2t_ref[...],
                      preferred_element_type=jnp.float32)  # (2*Bb, C)
    # sigmoid(mlp(max) + mlp(avg))  (shared MLP applied column-wise is equivalent)
    ch_att = jax.nn.sigmoid(mlp_out[:Bb] + mlp_out[Bb:])   # (Bb, C)

    x1 = ch_att[:, :, None] * x                            # (Bb, C, L)

    # ---- spatial attention: max/mean over channel dim + 1x1 conv over the 2 maps ----
    smax = jnp.max(x1, axis=1, keepdims=True)              # (Bb, 1, L)
    savg = jnp.sum(x1, axis=1, keepdims=True) * inv_C      # (Bb, 1, L)
    # w_spatial[0] multiplies the channel-max map, w_spatial[1] the channel-mean
    # map -- matches torch.cat([max_out, avg_out], dim=1) ordering in the source.
    sp = jax.nn.sigmoid(wsp_ref[0] * smax + wsp_ref[1] * savg)   # (Bb, 1, L)

    o_ref[...] = (sp * x1).astype(o_ref.dtype)             # (Bb, C, L), lane-dense store


def _pick_block_b(B, C, L, dtype_bytes, target_bytes=2 << 20):
    """Pick a batch-block size: ~1-4 MiB tiles, >=2 grid steps when B >= 2,
    and an even divisor of B so every block is full."""
    bb = max(1, target_bytes // (C * L * dtype_bytes))
    bb = min(bb, B)
    if B >= 2:
        bb = min(bb, (B + 1) // 2)      # keep >=2 grid steps (feed both v7x TCs)
    while B % bb != 0:
        bb -= 1
    return bb


def cbam_forward(x, w1, w2, w_spatial, block_b=None):
    """x: (B, C, L); w1: (C//r, C); w2: (C, C//r); w_spatial: (2,) f32."""
    B, C, L = x.shape
    Cr = w1.shape[0]
    dtype_bytes = jnp.dtype(x.dtype).itemsize

    if block_b is None:
        block_b = _pick_block_b(B, C, L, dtype_bytes)
    grid_b = B // block_b

    # Pre-transpose weights (static, free) so in-kernel matmuls are lane-dense:
    # (2*Bb, C) @ (C, Cr) -> ReLU -> @ (Cr, C).
    w1t = jnp.transpose(w1)   # (C, Cr)
    w2t = jnp.transpose(w2)   # (Cr, C)

    # Explicit VMEM budget: 2 double-buffered input tiles + 2 output buffers
    # + weights, with headroom; capped so it stays portable to v7x (64 MiB VMEM).
    tile_bytes = block_b * C * L * dtype_bytes
    weight_bytes = 2 * C * Cr * 4
    vmem_bytes = 4 * tile_bytes + 2 * weight_bytes + (8 << 20)
    vmem_bytes = int(min(max(vmem_bytes, 16 << 20), 48 << 20))

    return pl.pallas_call(
        cbam_kernel,
        out_shape=jax.ShapeDtypeStruct((B, C, L), x.dtype),
        grid=(grid_b,),
        in_specs=[
            pl.BlockSpec(memory_space=pltpu.MemorySpace.SMEM),        # w_spatial (2,)
            pl.BlockSpec((block_b, C, L), lambda b: (b, 0, 0)),       # x batch block
            pl.BlockSpec((C, Cr), lambda b: (0, 0)),                  # w1.T
            pl.BlockSpec((Cr, C), lambda b: (0, 0)),                  # w2.T
        ],
        out_specs=pl.BlockSpec((block_b, C, L), lambda b: (b, 0, 0)),
        compiler_params=pltpu.CompilerParams(
            dimension_semantics=("parallel",),
            vmem_limit_bytes=vmem_bytes,
        ),
    )(w_spatial, x, w1t, w2t)


def cbam_ref(x, w1, w2, w_spatial):
    """Pure-JAX reference mirroring the PyTorch forward pass exactly."""
    mx = jnp.max(x, axis=2, keepdims=True)      # (B, C, 1)
    av = jnp.mean(x, axis=2, keepdims=True)     # (B, C, 1)

    def mlp(p):
        h = jnp.einsum('rc,bco->bro', w1, p)
        h = jnp.maximum(h, 0.0)
        return jnp.einsum('cr,bro->bco', w2, h)

    ch = jax.nn.sigmoid(mlp(mx) + mlp(av))      # (B, C, 1)
    x1 = ch * x
    smax = jnp.max(x1, axis=1, keepdims=True)   # (B, 1, L)
    savg = jnp.mean(x1, axis=1, keepdims=True)  # (B, 1, L)
    sp = jax.nn.sigmoid(w_spatial[0] * smax + w_spatial[1] * savg)
    return sp * x1


if __name__ == "__main__":
    # Small shapes consistent with the module (channel divisible by reduction,
    # L a multiple of 128 for lane-dense tiles, B > block_b so the grid has >1 step).
    B, C, L = 8, 64, 128
    reduction = 16
    Cr = C // reduction

    key = jax.random.PRNGKey(0)
    kx, k1, k2, k3 = jax.random.split(key, 4)

    x = jax.random.normal(kx, (B, C, L), dtype=jnp.float32)
    # Conv2d 1x1, no bias -> plain matrices.
    w1 = jax.random.normal(k1, (Cr, C), dtype=jnp.float32) * 0.05    # mlp[0].weight (Cr, C, 1, 1)
    w2 = jax.random.normal(k2, (C, Cr), dtype=jnp.float32) * 0.05    # mlp[2].weight (C, Cr, 1, 1)
    w_spatial = jax.random.normal(k3, (2,), dtype=jnp.float32) * 0.5  # conv.weight (1, 2, 1, 1)

    out = cbam_forward(x, w1, w2, w_spatial)
    out = jax.block_until_ready(out)

    ref = cbam_ref(x, w1, w2, w_spatial)
    assert out.shape == (B, C, L)
    assert jnp.allclose(out, ref, rtol=1e-5, atol=1e-5), "mismatch vs reference"

    print("KERNEL_OK")
</pallas_src>

<mosaic_0001>
module attributes {stable_mosaic.version = 11 : i64} {
  func.func @cbam_kernel(%arg0: i32, %arg1: memref<2xf32, #tpu.memory_space<smem>>, %arg2: memref<4x64x128xf32, #tpu.memory_space<vmem>>, %arg3: memref<64x4xf32, #tpu.memory_space<vmem>>, %arg4: memref<4x64xf32, #tpu.memory_space<vmem>>, %arg5: memref<4x64x128xf32, #tpu.memory_space<vmem>>) attributes {dimension_semantics = [#tpu.dimension_semantics<parallel>], iteration_bounds = array<i64: 2>, scalar_prefetch = 0 : i64, scratch_operands = 0 : i64, tpu.core_type = #tpu.core_type<tc>, window_params = [{transform_indices = @transform_0, window_bounds = array<i64: 2>}, {transform_indices = @transform_1, window_bounds = array<i64: 4, 64, 128>}, {pipeline_mode = #tpu.pipeline_mode<synchronous>, transform_indices = @transform_2, window_bounds = array<i64: 64, 4>}, {pipeline_mode = #tpu.pipeline_mode<synchronous>, transform_indices = @transform_3, window_bounds = array<i64: 4, 64>}, {transform_indices = @transform_4, window_bounds = array<i64: 4, 64, 128>}]} {
    %c0 = arith.constant 0 : index
    %c0_0 = arith.constant 0 : index
    %c0_1 = arith.constant 0 : index
    %0 = vector.load %arg2[%c0, %c0_0, %c0_1] : memref<4x64x128xf32, #tpu.memory_space<vmem>>, vector<4x64x128xf32>
    %cst = arith.constant dense<0xFF800000> : vector<4x64xf32>
    %1 = vector.multi_reduction <maximumf>, %0, %cst [2] : vector<4x64x128xf32> to vector<4x64xf32>
    %cst_2 = arith.constant dense<0.000000e+00> : vector<4x64xf32>
    %2 = vector.multi_reduction <add>, %0, %cst_2 [2] : vector<4x64x128xf32> to vector<4x64xf32>
    %cst_3 = arith.constant 7.812500e-03 : f32
    %3 = vector.broadcast %cst_3 : f32 to vector<4x64xf32>
    %4 = arith.mulf %2, %3 : vector<4x64xf32>
    %5 = tpu.concatenate %1, %4 in 0 : vector<4x64xf32>, vector<4x64xf32> -> vector<8x64xf32>
    %c0_4 = arith.constant 0 : index
    %c0_5 = arith.constant 0 : index
    %6 = vector.load %arg3[%c0_4, %c0_5] : memref<64x4xf32, #tpu.memory_space<vmem>>, vector<64x4xf32>
    %cst_6 = arith.constant dense<0.000000e+00> : vector<8x4xf32>
    %7 = tpu.matmul %5, %6, %cst_6 {dimension_numbers = #tpu.dot_dimension_numbers<[1], [0], [0], [1], [0, 0, 1, 1], [], []>} : vector<8x64xf32>, vector<64x4xf32>, vector<8x4xf32> -> vector<8x4xf32>
    %cst_7 = arith.constant 0.000000e+00 : f32
    %8 = vector.broadcast %cst_7 : f32 to vector<8x4xf32>
    %9 = arith.maximumf %7, %8 : vector<8x4xf32>
    %c0_8 = arith.constant 0 : index
    %c0_9 = arith.constant 0 : index
    %10 = vector.load %arg4[%c0_8, %c0_9] : memref<4x64xf32, #tpu.memory_space<vmem>>, vector<4x64xf32>
    %cst_10 = arith.constant dense<0.000000e+00> : vector<8x64xf32>
    %11 = tpu.matmul %9, %10, %cst_10 {dimension_numbers = #tpu.dot_dimension_numbers<[1], [0], [0], [1], [0, 0, 1, 1], [], []>} : vector<8x4xf32>, vector<4x64xf32>, vector<8x64xf32> -> vector<8x64xf32>
    %12 = vector.extract_strided_slice %11 {offsets = [0, 0], sizes = [4, 64], strides = [1, 1]} : vector<8x64xf32> to vector<4x64xf32>
    %13 = vector.extract_strided_slice %11 {offsets = [4, 0], sizes = [4, 64], strides = [1, 1]} : vector<8x64xf32> to vector<4x64xf32>
    %14 = arith.addf %12, %13 : vector<4x64xf32>
    %15 = arith.negf %14 : vector<4x64xf32>
    %16 = math.exp %15 : vector<4x64xf32>
    %cst_11 = arith.constant 1.000000e+00 : f32
    %17 = vector.broadcast %cst_11 : f32 to vector<4x64xf32>
    %18 = arith.addf %17, %16 : vector<4x64xf32>
    %19 = arith.divf %17, %18 : vector<4x64xf32>
    %20 = vector.shape_cast %19 : vector<4x64xf32> to vector<4x64x1xf32>
    %21 = vector.broadcast %20 : vector<4x64x1xf32> to vector<4x64x128xf32>
    %22 = arith.mulf %21, %0 : vector<4x64x128xf32>
    %cst_12 = arith.constant dense<0xFF800000> : vector<4x128xf32>
    %23 = vector.multi_reduction <maximumf>, %22, %cst_12 [1] : vector<4x64x128xf32> to vector<4x128xf32>
    %24 = vector.shape_cast %23 : vector<4x128xf32> to vector<4x1x128xf32>
    %cst_13 = arith.constant dense<0.000000e+00> : vector<4x128xf32>
    %25 = vector.multi_reduction <add>, %22, %cst_13 [1] : vector<4x64x128xf32> to vector<4x128xf32>
    %26 = vector.shape_cast %25 : vector<4x128xf32> to vector<4x1x128xf32>
    %cst_14 = arith.constant 1.562500e-02 : f32
    %27 = vector.broadcast %cst_14 : f32 to vector<4x1x128xf32>
    %28 = arith.mulf %26, %27 : vector<4x1x128xf32>
    %c0_15 = arith.constant 0 : index
    %29 = memref.load %arg1[%c0_15] : memref<2xf32, #tpu.memory_space<smem>>
    %30 = vector.broadcast %29 : f32 to vector<4x1x128xf32>
    %31 = arith.mulf %30, %24 : vector<4x1x128xf32>
    %c1 = arith.constant 1 : index
    %32 = memref.load %arg1[%c1] : memref<2xf32, #tpu.memory_space<smem>>
    %33 = vector.broadcast %32 : f32 to vector<4x1x128xf32>
    %34 = arith.mulf %33, %28 : vector<4x1x128xf32>
    %35 = arith.addf %31, %34 : vector<4x1x128xf32>
    %36 = arith.negf %35 : vector<4x1x128xf32>
    %37 = math.exp %36 : vector<4x1x128xf32>
    %cst_16 = arith.constant 1.000000e+00 : f32
    %38 = vector.broadcast %cst_16 : f32 to vector<4x1x128xf32>
    %39 = arith.addf %38, %37 : vector<4x1x128xf32>
    %40 = arith.divf %38, %39 : vector<4x1x128xf32>
    %41 = vector.broadcast %40 : vector<4x1x128xf32> to vector<4x64x128xf32>
    %42 = arith.mulf %41, %22 : vector<4x64x128xf32>
    %c0_17 = arith.constant 0 : index
    %c0_18 = arith.constant 0 : index
    %c0_19 = arith.constant 0 : index
    %43 = vector.load %arg5[%c0_17, %c0_18, %c0_19] : memref<4x64x128xf32, #tpu.memory_space<vmem>>, vector<4x64x128xf32>
    tpu.vector_store %arg5[%c0_17, %c0_18, %c0_19], %42 {strides = array<i32>} : memref<4x64x128xf32, #tpu.memory_space<vmem>>, vector<4x64x128xf32>,
    return
  }
  func.func @transform_0(%arg0: i32) -> i32 {
    %c0_i32 = arith.constant 0 : i32
    %c0_i32_0 = arith.constant 0 : i32
    return %c0_i32 : i32
  }
  func.func @transform_1(%arg0: i32) -> (i32, i32, i32) {
    %c0_i32 = arith.constant 0 : i32
    %c0_i32_0 = arith.constant 0 : i32
    %c0_i32_1 = arith.constant 0 : i32
    return %arg0, %c0_i32, %c0_i32_0 : i32, i32, i32
  }
  func.func @transform_2(%arg0: i32) -> (i32, i32) {
    %c0_i32 = arith.constant 0 : i32
    %c0_i32_0 = arith.constant 0 : i32
    %c0_i32_1 = arith.constant 0 : i32
    return %c0_i32, %c0_i32_0 : i32, i32
  }
  func.func @transform_3(%arg0: i32) -> (i32, i32) {
    %c0_i32 = arith.constant 0 : i32
    %c0_i32_0 = arith.constant 0 : i32
    %c0_i32_1 = arith.constant 0 : i32
    return %c0_i32, %c0_i32_0 : i32, i32
  }
  func.func @transform_4(%arg0: i32) -> (i32, i32, i32) {
    %c0_i32 = arith.constant 0 : i32
    %c0_i32_0 = arith.constant 0 : i32
    %c0_i32_1 = arith.constant 0 : i32
    return %arg0, %c0_i32, %c0_i32_0 : i32, i32, i32
  }
}

</mosaic_0001>

<bundles_post_ra>
// kernel: tpu_custom_call.1
= control target key start
LH: loop header
LB: loop body
LE: loop exit
PB: predicated region body
PF: predicated region fallthrough
CT: control target
= control target key end

     0   :  { %s2384_s0 = inlined_call_operand.vmem [shape: f32[2], index: 0, kind: input, shape index: {}]   ;;  %s2385_s1 = inlined_call_operand.hbm [shape: f32[8,64,128], index: 1, kind: input, shape index: {}]   ;;  %s2386_s2 = inlined_call_operand.vmem [shape: f32[64,4], index: 2, kind: input, shape index: {}]   ;;  %s2387_s3 = inlined_call_operand.vmem [shape: f32[4,64], index: 3, kind: input, shape index: {}]   ;;  %s2388_s4 = inlined_call_operand.hbm [shape: f32[8,64,128], index: 4, kind: output, shape index: {}]  }
   0x1   :  { %2389 = sst [smem:[#allocation11_spill]] %s2384_s0 }
   0x2   :  { %9 = vsyncpa [#allocation5], 0 }
   0x3   :  { %10 = vsyncpa [#allocation3], 0 }
   0x4   :  { %12 = vsyncpa [#allocation3 + $0x1], 0 }
   0x5   :  { %13 = vsyncpa [#allocation4], 0 }
   0x6   :  { %15 = vsyncpa [#allocation4 + $0x1], 0  ;;  %s1629_s15 = smov 0   ;;  %s1631_s16 = smov 0  }
   0x7   :  { %s1633_s17 = smov 0   ;;  %s1635_s18 = smov 0  }
   0x8 LB: > { %s1650_s19 = sadd.s32 4294967295, %s1597_s18   ;;  %s1321_s20 = sadd.s32 4294967294, %s1597_s18   ;;  %s1597_s18 = sphi %s1635_s18, %s2401_s18   ;;  %s1593_s17 = sphi %s1633_s17, %s2400_s17   ;;  %s1589_s16 = sphi %s1631_s16, %s2399_s16   ;;  %s1585_s15 = sphi %s1629_s15, %s2398_s15  }
   0x9   : > { %s1654_s21 = sadd.s32 1, %s1597_s18   ;;  %s49_s22 = sadd.s32 1, %s1593_s17 }
   0xa   : > { %s46_s23 = ssub.s32 %s1597_s18, %s1654_s21  ;;  %p56_p0 = scmp.ne.s32.totalorder %s1593_s17, %s1589_s16 }
   0xb   : > { %p47_p1 = scmp.eq.s32.totalorder %s46_s23, 0  ;;  %p57_p2 = scmp.eq.s32.totalorder %s1597_s18, 0 }
   0xc   : > { %p62_p3 = scmp.ne.s32.totalorder %s1589_s16, %s1585_s15  ;;  %p63_p4 = scmp.eq.s32.totalorder %s1650_s19, 0 }
   0xd   : > { %s1666_s24 = scalar_select %p47_p1, %s1593_s17, %s49_s22  }
   0xe   : > { %p1668_p5 = por %p57_p2, %p56_p0  ;;  %p1674_p6 = por %p63_p4, %p62_p3 }
   0xf   : > { %p128_p7 = scmp.eq.s32.totalorder %s1650_s19, 1  ;;  %p134_p8 = scmp.eq.s32.totalorder %s1321_s20, 1 }
  0x10   : > { %p1322_p9 = scmp.ge.s32.totalorder %s1597_s18, 1  ;;  %p141_p10 = scmp.lt.s32.totalorder %s1597_s18, 3 }
  0x11   : > { %p1681_p11 = por %p128_p7, %p56_p0  ;;  %p1685_p12 = por %p134_p8, %p62_p3 }
  0x12   : > { %p1689_p13 = pnand %p1322_p9, %p141_p10  ;;  %s2395_s0 = sld [smem:[#allocation11_spill]] }
  0x13   : > { %p1373_p2 = scmp.lt.s32.totalorder %s1597_s18, 2  ;;  %s170_s7 = sand.u32 1, %s1593_s17  }
  0x14   : > { %p1360_p1 = pneg %p1689_p13  ;;  %s1325_s9 = sshll.u32 %s170_s7, 8 }
  0x15   : > { %p1705_p3 = pnand %p1373_p2, %p1668_p5  ;;  %s1599_s10 = smov [#allocation2]  }
  0x16   : > { %p1361_p7 = pnand %p1360_p1, %p63_p4  ;;  %s1349_s11 = sshll.u32 %s1597_s18, 8 }
  0x17   : > { %s174_s12 = scalar_lea.vmem [#allocation6], %s1325_s9  ;;  %s180_s22 = scalar_lea.hbm %s2385_s1, %s1349_s11 }
  0x18   : > { %s153_s6 = sshll.u32 %s2395_s0, 4  ;;  %s183_s13 = sshll.u32 %s174_s12, 4  ;;  %s154_s6 = int_to_ptr.vmem [resolvable:$true] %s153_s6  ;;  %s184_s13 = int_to_ptr.vmem [resolvable:$true] %s183_s13 }
  0x19   : > { %1363 = dma.vmem_to_smem (!%p1361_p7), %s154_s6, 16, %s1599_s10, [#allocation5]  }
  0x1a   : > { %s181_s23 = sshll.u32 %s180_s22, 4  ;;  %s171_s30 = scalar_lea.sflag [#allocation3], %s170_s7  ;;  %s182_s23 = int_to_ptr.hbm [resolvable:$true] %s181_s23 }
  0x1b   : > { %s1497_s25 = sshra.s32 %s182_s23, 4  ;;  %p1501_p8 = pneg %p1705_p3  ;;  %s1498_s25 = int_to_ptr.hbm [resolvable:$true] %s1497_s25 }
  0x1c   : > { %s1499_s5 = scalar_lea.hbm %s1498_s25, 256  ;;  %s1504_s9 = scalar_lea.hbm %s2385_s1, 512 }
  0x1d   : > { %p1500_p5 = scmp.ne.s32.totalorder %s1498_s25, %s1499_s5  ;;  %p1505_p1 = scmp.lt.s32.totalorder %s1498_s25, %s2385_s1 }
  0x1e   : > { %p1506_p2 = scmp.lt.s32.totalorder %s1504_s9, %s1499_s5 }
  0x1f   : > { %p1502_p9 = pnand %p1501_p8, %p1500_p5 }
  0x20   : > { %p1507_p7 = por %p1506_p2, %p1505_p1 }
  0x21   : > { %p1503_p10 = pneg %p1502_p9 }
  0x23   : > { %p1508_p0 = pnand %p1507_p7, %p1503_p10 }
  0x25   : > { %1511 = shalt.err (!%p1508_p0)
}
  0x26   : > { %s1600_s7 = smov 128   ;;  %s1601_s11 = smov 8  }
  0x27   : > { %1367 = dma.hbm_to_vmem [thread:$0]  (!%p1705_p3), %s182_s23, 4096, %s184_s13, %s171_s30, %s1600_s7, %s1600_s7, %s1601_s11  }
  0x28   : > { %195 = sbr.rel (%p1689_p13) target bundleno = 994 (0x3e2), region = 36 }
  0x2d   : > { %1572 = dma.done.wait (%p63_p4), [#allocation5], 16  }
  0x2e   : > { %1574 = vsyncadd (%p63_p4), [#allocation5], 4294967280  ;;  %s1730_s0 = sand.u32 1, %s1589_s16  }
  0x2f   : > { %s1331_s14 = sshll.u32 %s1730_s0, 8  ;;  %s203_s20 = scalar_lea.sflag [#allocation3], %s1730_s0 }
  0x30   : > { %s1736_s8 = scalar_lea.vmem [#allocation6], %s1331_s14 }
  0x31   : > { %1576 = dma.done.wait (%p1674_p6), %s203_s20, 4096  }
  0x32   : > { %1578 = vsyncadd (%p1674_p6), %s203_s20, 4294963200 }
  0x33   : > { %212 = sfence }
  0x34   : > { %v243_v0 = vld [vmem:[%s1736_s8 + $0x40] sm:$0xff]  ;;  %v1744_v1 = vld [vmem:[%s1736_s8 + $0x10] sm:$0xff]  ;;  %v244_v3 = vld [vmem:[%s1736_s8 + $0x48] sm:$0xff]  ;;  %v459_v27 = vlaneseq  ;;  %vm464_vm0 = vcmask 130112   ;;  %vm468_vm1 = vcmask 195712   ;;  %vm472_vm2 = vcmask 261312  }
  0x35   : > { %v1747_v2 = vld [vmem:[%s1736_s8] sm:$0xff]  ;;  %347 = vadd.xlane.f32.xlu1 %v243_v0  ;;  %335 = vadd.xlane.f32.xlu2 %v1744_v1  ;;  %v245_v4 = vld [vmem:[%s1736_s8 + $0x50] sm:$0xff]  ;;  %v1754_v5 = vld [vmem:[%s1736_s8 + $0x8] sm:$0xff]  ;;  %vm476_vm3 = vcmask 326912   ;;  %vm480_vm4 = vcmask 392512   ;;  %vm484_vm5 = vcmask 458112  }
  0x36   : > { %331 = vadd.xlane.f32.xlu0 %v1747_v2  ;;  %v252_v6 = vld [vmem:[%s1736_s8 + $0x88] sm:$0xff]  ;;  %v251_v7 = vld [vmem:[%s1736_s8 + $0x80] sm:$0xff]  ;;  %v1762_v8 = vld [vmem:[%s1736_s8 + $0x58] sm:$0xff]  ;;  %v1816_v31 = vand.u32 127, %v459_v27  ;;  %vm488_vm6 = vcmask 523712   ;;  %vm634_vm7 = vcmask 1045509  }
  0x37   : > { %v253_v9 = vld [vmem:[%s1736_s8 + $0x90] sm:$0xff]  ;;  %v1766_v10 = vld [vmem:[%s1736_s8 + $0x18] sm:$0xff]  ;;  %v260_v11 = vld [vmem:[%s1736_s8 + $0xc8] sm:$0xff]  ;;  %vm636_vm8 = vcmask 1046534   ;;  %vm535_vm9 = vcmask 1041409   ;;  %vm537_vm10 = vcmask 1042434  }
  0x38   : > { %v259_v12 = vld [vmem:[%s1736_s8 + $0xc0] sm:$0xff]  ;;  %v254_v14 = vld [vmem:[%s1736_s8 + $0x98] sm:$0xff]  ;;  %v261_v16 = vld [vmem:[%s1736_s8 + $0xd0] sm:$0xff]  ;;  %v1821_v33 = vadd.s32 4294967288, %v1816_v31  ;;  %v1824_v34 = vadd.s32 4294967280, %v1816_v31  ;;  %vm638_vm11 = vcmask 1047559  }
  0x39   : > { %v1774_v13 = vld [vmem:[%s1736_s8 + $0x60] sm:$0xff]  ;;  %v1786_v17 = vld [vmem:[%s1736_s8 + $0x68] sm:$0xff]  ;;  %v262_v20 = vld [vmem:[%s1736_s8 + $0xd8] sm:$0xff]  ;;  %vm539_vm12 = vcmask 1043459   ;;  %vm641_vm13 = vcmask 1043456   ;;  %vm651_vm14 = vcmask 523264  }
  0x3a   : > { %v1778_v15 = vld [vmem:[%s1736_s8 + $0x20] sm:$0xff]  ;;  %v1790_v19 = vld [vmem:[%s1736_s8 + $0x28] sm:$0xff]  ;;  %v1798_v21 = vld [vmem:[%s1736_s8 + $0x30] sm:$0xff]  ;;  %vm677_vm15 = vcmask 31744   ;;  %s1063_s22 = sld [smem:[#allocation2]]  ;;  %s2182_s30 = scalar_lea.vmem [#allocation7], %s1331_s14 }
  0x3b   : > { %v255_v18 = vld [vmem:[%s1736_s8 + $0xa0] sm:$0xff]  ;;  %v256_v22 = vld [vmem:[%s1736_s8 + $0xa8] sm:$0xff]  ;;  %v1804_v24 = vld [vmem:[%s1736_s8 + $0x70] sm:$0xff]  ;;  %s1337_s23 = sld [smem:[#allocation2 + $0x1]]  ;;  %s1351_s14 = sshll.u32 %s1650_s19, 8 }
  0x3c   : > { %v263_v23 = vld [vmem:[%s1736_s8 + $0xe0] sm:$0xff]  ;;  %v1810_v29 = vld [vmem:[%s1736_s8 + $0x38] sm:$0xff]  ;;  %v264_v44 = vld [vmem:[%s1736_s8 + $0xe8] sm:$0xff]  ;;  %s1232_s5 = scalar_lea.hbm %s2388_s4, %s1351_s14  ;;  %s1233_s19 = sshll.u32 %s2182_s30, 4  ;;  %s1234_s19 = int_to_ptr.vmem [resolvable:$true] %s1233_s19 }
  0x3d   : > { %349 = vadd.xlane.f32.xlu1 %v244_v3  ;;  %351 = vadd.xlane.f32.xlu2 %v245_v4  ;;  %v1813_v30 = vld [vmem:[%s1736_s8 + $0x78] sm:$0xff]  ;;  %v257_v47 = vld [vmem:[%s1736_s8 + $0xb0] sm:$0xff]  ;;  %s1235_s6 = sshll.u32 %s1232_s5, 4  ;;  %s1220_s10 = scalar_lea.sflag [#allocation4], %s1730_s0  ;;  %s1236_s6 = int_to_ptr.hbm [resolvable:$true] %s1235_s6 }
  0x3e   : > { %333 = vadd.xlane.f32.xlu0 %v1754_v5  ;;  %s1541_s9 = sshra.s32 %s1236_s6, 4  ;;  %s1547_s20 = scalar_lea.hbm %s2388_s4, 512  ;;  %s1542_s9 = int_to_ptr.hbm [resolvable:$true] %s1541_s9 }
  0x3f   : > { %s1543_s12 = scalar_lea.hbm %s1542_s9, 256  ;;  %p1548_p0 = scmp.lt.s32.totalorder %s1542_s9, %s2388_s4 }
  0x40   : > { %p1544_p4 = scmp.ne.s32.totalorder %s1542_s9, %s1543_s12  ;;  %p1549_p3 = scmp.lt.s32.totalorder %s1547_s20, %s1543_s12 }
  0x42   : > { %p1545_p6 = pnand %p1544_p4, %p1681_p11  ;;  %p1550_p5 = por %p1549_p3, %p1548_p0 }
  0x44   : > { %p1546_p13 = pneg %p1545_p6 }
  0x45   : > { %365 = vadd.xlane.f32.xlu1 %v252_v6  ;;  %267 = vmax.xlane.f32.xlu2 %v1747_v2 }
  0x46   : > { %363 = vadd.xlane.f32.xlu0 %v251_v7  ;;  %p1551_p8 = pnand %p1550_p5, %p1546_p13 }
  0x4d   : > { %283 = vmax.xlane.f32.xlu1 %v243_v0  ;;  %285 = vmax.xlane.f32.xlu2 %v244_v3 }
  0x4e   : > { %269 = vmax.xlane.f32.xlu0 %v1754_v5 }
  0x55   : > { %353 = vadd.xlane.f32.xlu1 %v1762_v8  ;;  %367 = vadd.xlane.f32.xlu2 %v253_v9 }
  0x56   : > { %337 = vadd.xlane.f32.xlu0 %v1766_v10 }
  0x5d   : > { %381 = vadd.xlane.f32.xlu1 %v260_v11  ;;  %271 = vmax.xlane.f32.xlu2 %v1744_v1 }
  0x5e   : > { %379 = vadd.xlane.f32.xlu0 %v259_v12 }
  0x65   : > { %299 = vmax.xlane.f32.xlu1 %v251_v7  ;;  %301 = vmax.xlane.f32.xlu2 %v252_v6 }
  0x66   : > { %287 = vmax.xlane.f32.xlu0 %v245_v4 }
  0x6d   : > { %355 = vadd.xlane.f32.xlu1 %v1774_v13  ;;  %369 = vadd.xlane.f32.xlu2 %v254_v14 }
  0x6e   : > { %339 = vadd.xlane.f32.xlu0 %v1778_v15 }
  0x75   : > { %273 = vmax.xlane.f32.xlu1 %v1766_v10  ;;  %289 = vmax.xlane.f32.xlu2 %v1762_v8 }
  0x76   : > { %383 = vadd.xlane.f32.xlu0 %v261_v16 }
  0x7d   : > { %315 = vmax.xlane.f32.xlu1 %v259_v12  ;;  %317 = vmax.xlane.f32.xlu2 %v260_v11  ;;  %v265_v11 = vld [vmem:[%s1736_s8 + $0xf0] sm:$0xff] }
  0x7e   : > { %303 = vmax.xlane.f32.xlu0 %v253_v9 }
  0x85   : > { %357 = vadd.xlane.f32.xlu1 %v1786_v17  ;;  %371 = vadd.xlane.f32.xlu2 %v255_v18 }
  0x86   : > { %341 = vadd.xlane.f32.xlu0 %v1790_v19 }
  0x8d   : > { %275 = vmax.xlane.f32.xlu1 %v1778_v15  ;;  %291 = vmax.xlane.f32.xlu2 %v1774_v13 }
  0x8e   : > { %385 = vadd.xlane.f32.xlu0 %v262_v20 }
  0x95   : > { %319 = vmax.xlane.f32.xlu1 %v261_v16  ;;  %343 = vadd.xlane.f32.xlu2 %v1798_v21 }
  0x96   : > { %305 = vmax.xlane.f32.xlu0 %v254_v14  ;;  %v258_v14 = vld [vmem:[%s1736_s8 + $0xb8] sm:$0xff] }
  0x9d   : > { %373 = vadd.xlane.f32.xlu1 %v256_v22  ;;  %387 = vadd.xlane.f32.xlu2 %v263_v23 }
  0x9e   : > { %359 = vadd.xlane.f32.xlu0 %v1804_v24 }
  0xa5   : > { %293 = vmax.xlane.f32.xlu1 %v1786_v17  ;;  %307 = vmax.xlane.f32.xlu2 %v255_v18  ;;  %v1853_v18 = vadd.s32 4294967272, %v1816_v31 }
  0xa6   : > { %277 = vmax.xlane.f32.xlu0 %v1790_v19 }
  0xa8   : > { %v348_v25 = vpop.xlane.xlu1 %347  ;;  %v336_v26 = vpop.xlane.xlu2 %335 }
  0xa9   : > { %v332_v28 = vpop.xlane.xlu0 %331  ;;  %v403_v32 = vmul.f32 0.0078125, %v348_v25  ;;  %v397_v39 = vmul.f32 0.0078125, %v336_v26 }
  0xaa   : > { %v395_v35 = vmul.f32 0.0078125, %v332_v28 }
  0xab   : > { %v589_v38 = vperm.slane %v403_v32, %v1816_v31  ;;  %v577_v50 = vperm.slane %v397_v39, %v1824_v34 }
  0xac   : > { %v574_v48 = vperm.slane %v395_v35, %v1816_v31 }
  0xad   : > { %345 = vadd.xlane.f32.xlu1 %v1810_v29  ;;  %361 = vadd.xlane.f32.xlu2 %v1813_v30 }
  0xae   : > { %321 = vmax.xlane.f32.xlu0 %v262_v20 }
  0xb0   : > { %v350_v36 = vpop.xlane.xlu1 %349  ;;  %v352_v37 = vpop.xlane.xlu2 %351 }
  0xb1   : > { %v404_v40 = vmul.f32 0.0078125, %v350_v36  ;;  %v405_v41 = vmul.f32 0.0078125, %v352_v37  ;;  %v334_v42 = vpop.xlane.xlu0 %333 }
  0xb2   : > { %v396_v43 = vmul.f32 0.0078125, %v334_v42 }
  0xb3   : > { %v590_v45 = vperm.slane %v404_v40, %v1821_v33  ;;  %v592_v46 = vperm.slane %v405_v41, %v1824_v34 }
  0xb4   : > { %v575_v49 = vperm.slane %v396_v43, %v1821_v33 }
  0xb5   : > { %v591_v51 = vsel %vm464_vm0, %v590_v45, %v589_v38  ;;  %389 = vadd.xlane.f32.xlu1 %v264_v44  ;;  %279 = vmax.xlane.f32.xlu2 %v1798_v21 }
  0xb6   : > { %v593_v52 = vsel %vm468_vm1, %v592_v46, %v591_v51  ;;  %v576_v53 = vsel %vm464_vm0, %v575_v49, %v574_v48  ;;  %375 = vadd.xlane.f32.xlu0 %v257_v47 }
  0xb7   : > { %v578_v54 = vsel %vm468_vm1, %v577_v50, %v576_v53  ;;  %v266_v50 = vld [vmem:[%s1736_s8 + $0xf8] sm:$0xff] }
  0xb8   : > { %v366_v55 = vpop.xlane.xlu1 %365  ;;  %v268_v56 = vpop.xlane.xlu2 %267 }
  0xb9   : > { %v412_v57 = vmul.f32 0.0078125, %v366_v55  ;;  %v364_v58 = vpop.xlane.xlu0 %363  ;;  %v461_v63 = vperm.slane %v268_v56, %v1816_v31 }
  0xba   : > { %v411_v59 = vmul.f32 0.0078125, %v364_v58 }
  0xbb   : > { %v605_v60 = vperm.slane %v412_v57, %v1821_v33 }
  0xbc   : > { %v604_v61 = vperm.slane %v411_v59, %v1816_v31  ;;  %v1874_v59 = vadd.s32 4294967264, %v1816_v31 }
  0xbd   : > { %309 = vmax.xlane.f32.xlu1 %v256_v22  ;;  %323 = vmax.xlane.f32.xlu2 %v263_v23 }
  0xbe   : > { %v606_v62 = vsel %vm464_vm0, %v605_v60, %v604_v61  ;;  %295 = vmax.xlane.f32.xlu0 %v1804_v24 }
  0xc0   : > { %v284_v0 = vpop.xlane.xlu1 %283  ;;  %v286_v3 = vpop.xlane.xlu2 %285 }
  0xc1   : > { %v490_v4 = vperm.slane %v284_v0, %v1816_v31  ;;  %v491_v6 = vperm.slane %v286_v3, %v1821_v33  ;;  %v270_v7 = vpop.xlane.xlu0 %269 }
  0xc2   : > { %v463_v9 = vperm.slane %v270_v7, %v1821_v33 }
  0xc3   : > { %v492_v12 = vsel %vm464_vm0, %v491_v6, %v490_v4 }
  0xc4   : > { %v465_v16 = vsel %vm464_vm0, %v463_v9, %v461_v63 }
  0xc5   : > { %391 = vadd.xlane.f32.xlu1 %v265_v11  ;;  %281 = vmax.xlane.f32.xlu2 %v1810_v29 }
  0xc6   : > { %377 = vadd.xlane.f32.xlu0 %v258_v14 }
  0xc8   : > { %v354_v20 = vpop.xlane.xlu1 %353  ;;  %v368_v22 = vpop.xlane.xlu2 %367 }
  0xc9   : > { %v406_v23 = vmul.f32 0.0078125, %v354_v20  ;;  %v413_v25 = vmul.f32 0.0078125, %v368_v22  ;;  %v338_v26 = vpop.xlane.xlu0 %337 }
  0xca   : > { %v398_v28 = vmul.f32 0.0078125, %v338_v26 }
  0xcb   : > { %v594_v32 = vperm.slane %v406_v23, %v1853_v18  ;;  %v607_v35 = vperm.slane %v413_v25, %v1824_v34 }
  0xcc   : > { %v579_v36 = vperm.slane %v398_v28, %v1853_v18 }
  0xcd   : > { %v595_v37 = vsel %vm472_vm2, %v594_v32, %v593_v52  ;;  %v608_v38 = vsel %vm468_vm1, %v607_v35, %v606_v62  ;;  %311 = vmax.xlane.f32.xlu1 %v257_v47  ;;  %325 = vmax.xlane.f32.xlu2 %v264_v44 }
  0xce   : > { %v580_v39 = vsel %vm472_vm2, %v579_v36, %v578_v54  ;;  %297 = vmax.xlane.f32.xlu0 %v1813_v30 }
  0xd0   : > { %v382_v40 = vpop.xlane.xlu1 %381  ;;  %v272_v41 = vpop.xlane.xlu2 %271 }
  0xd1   : > { %v420_v42 = vmul.f32 0.0078125, %v382_v40  ;;  %v467_v43 = vperm.slane %v272_v41, %v1824_v34  ;;  %v380_v45 = vpop.xlane.xlu0 %379 }
  0xd2   : > { %v419_v46 = vmul.f32 0.0078125, %v380_v45  ;;  %v1896_v45 = vadd.s32 4294967256, %v1816_v31 }
  0xd3   : > { %v620_v48 = vperm.slane %v420_v42, %v1821_v33  ;;  %v469_v49 = vsel %vm468_vm1, %v467_v43, %v465_v16 }
  0xd4   : > { %v619_v51 = vperm.slane %v419_v46, %v1816_v31 }
  0xd5   : > { %313 = vmax.xlane.f32.xlu1 %v258_v14  ;;  %327 = vmax.xlane.f32.xlu2 %v265_v11 }
  0xd6   : > { %v621_v44 = vsel %vm464_vm0, %v620_v48, %v619_v51  ;;  %393 = vadd.xlane.f32.xlu0 %v266_v50 }
  0xd8   : > { %v300_v47 = vpop.xlane.xlu1 %299  ;;  %v302_v52 = vpop.xlane.xlu2 %301 }
  0xd9   : > { %v505_v53 = vperm.slane %v300_v47, %v1816_v31  ;;  %v506_v54 = vperm.slane %v302_v52, %v1821_v33  ;;  %v288_v55 = vpop.xlane.xlu0 %287 }
  0xda   : > { %v493_v56 = vperm.slane %v288_v55, %v1824_v34 }
  0xdb   : > { %v507_v57 = vsel %vm464_vm0, %v506_v54, %v505_v53 }
  0xdc   : > { %v494_v58 = vsel %vm468_vm1, %v493_v56, %v492_v12 }
  0xde   : > { %329 = vmax.xlane.f32.xlu0 %v266_v50 }
  0xe0   : > { %v356_v60 = vpop.xlane.xlu1 %355  ;;  %v370_v61 = vpop.xlane.xlu2 %369 }
  0xe1   : > { %v407_v62 = vmul.f32 0.0078125, %v356_v60  ;;  %v414_v63 = vmul.f32 0.0078125, %v370_v61  ;;  %v340_v0 = vpop.xlane.xlu0 %339 }
  0xe2   : > { %v399_v3 = vmul.f32 0.0078125, %v340_v0 }
  0xe3   : > { %v596_v4 = vperm.slane %v407_v62, %v1874_v59  ;;  %v609_v6 = vperm.slane %v414_v63, %v1853_v18 }
  0xe4   : > { %v581_v7 = vperm.slane %v399_v3, %v1874_v59 }
  0xe5   : > { %v597_v9 = vsel %vm476_vm3, %v596_v4, %v595_v37  ;;  %v610_v11 = vsel %vm472_vm2, %v609_v6, %v608_v38 }
  0xe6   : > { %v582_v12 = vsel %vm476_vm3, %v581_v7, %v580_v39 }
  0xe8   : > { %v274_v14 = vpop.xlane.xlu1 %273  ;;  %v290_v16 = vpop.xlane.xlu2 %289 }
  0xe9   : > { %v471_v20 = vperm.slane %v274_v14, %v1853_v18  ;;  %v495_v22 = vperm.slane %v290_v16, %v1853_v18  ;;  %v384_v23 = vpop.xlane.xlu0 %383 }
  0xea   : > { %v421_v25 = vmul.f32 0.0078125, %v384_v23 }
  0xeb   : > { %v473_v26 = vsel %vm472_vm2, %v471_v20, %v469_v49  ;;  %v496_v28 = vsel %vm472_vm2, %v495_v22, %v494_v58 }
  0xec   : > { %v622_v32 = vperm.slane %v421_v25, %v1824_v34 }
  0xee   : > { %v623_v35 = vsel %vm468_vm1, %v622_v32, %v621_v44 }
  0xf0   : > { %v316_v36 = vpop.xlane.xlu1 %315  ;;  %v318_v37 = vpop.xlane.xlu2 %317 }
  0xf1   : > { %v520_v38 = vperm.slane %v316_v36, %v1816_v31  ;;  %v521_v39 = vperm.slane %v318_v37, %v1821_v33  ;;  %v304_v40 = vpop.xlane.xlu0 %303 }
  0xf2   : > { %v508_v41 = vperm.slane %v304_v40, %v1824_v34 }
  0xf3   : > { %v1892_v42 = vsel %vm464_vm0, %v521_v39, %v520_v38 }
  0xf4   : > { %v509_v43 = vsel %vm468_vm1, %v508_v41, %v507_v57 }
  0xf8   : > { %v358_v46 = vpop.xlane.xlu1 %357  ;;  %v372_v48 = vpop.xlane.xlu2 %371 }
  0xf9   : > { %v408_v49 = vmul.f32 0.0078125, %v358_v46  ;;  %v415_v50 = vmul.f32 0.0078125, %v372_v48  ;;  %v342_v51 = vpop.xlane.xlu0 %341 }
  0xfa   : > { %v400_v44 = vmul.f32 0.0078125, %v342_v51 }
  0xfb   : > { %v598_v33 = vperm.slane %v408_v49, %v1896_v45  ;;  %v611_v47 = vperm.slane %v415_v50, %v1874_v59 }
  0xfc   : > { %v583_v52 = vperm.slane %v400_v44, %v1896_v45  ;;  %v650_v44 = vld [vmem:[%s2386_s2 + $0x38] sm:$0xff] }
  0xfd   : > { %v599_v53 = vsel %vm480_vm4, %v598_v33, %v597_v9  ;;  %v1903_v54 = vsel %vm476_vm3, %v611_v47, %v610_v11  ;;  %663 = vmatpush.msra.mxu0 %v650_v44 }
  0xfe   : > { %v584_v55 = vsel %vm480_vm4, %v583_v52, %v582_v12 }
 0x100   : > { %v276_v56 = vpop.xlane.xlu1 %275  ;;  %v292_v57 = vpop.xlane.xlu2 %291 }
 0x101   : > { %v475_v58 = vperm.slane %v276_v56, %v1874_v59  ;;  %v497_v60 = vperm.slane %v292_v57, %v1874_v59  ;;  %v386_v61 = vpop.xlane.xlu0 %385  ;;  %v649_v57 = vld [vmem:[%s2386_s2 + $0x30] sm:$0xff] }
 0x102   : > { %v422_v62 = vmul.f32 0.0078125, %v386_v61  ;;  %664 = vmatpush.msra.mxu0 %v649_v57 }
 0x103   : > { %v1909_v63 = vsel %vm476_vm3, %v475_v58, %v473_v26  ;;  %v1912_v0 = vsel %vm476_vm3, %v497_v60, %v496_v28  ;;  %v1933_v26 = vadd.s32 4294967248, %v1816_v31  ;;  %v646_v58 = vld [vmem:[%s2386_s2 + $0x18] sm:$0xff] }
 0x104   : > { %v624_v3 = vperm.slane %v422_v62, %v1853_v18 }
 0x106   : > { %v1916_v4 = vsel %vm472_vm2, %v624_v3, %v623_v35  ;;  %v1936_v35 = vadd.s32 4294967240, %v1816_v31  ;;  %v645_v3 = vld [vmem:[%s2386_s2 + $0x10] sm:$0xff] }
 0x108   : > { %v1918_v6 = vpop.xlane.xlu1 %319  ;;  %v344_v7 = vpop.xlane.xlu2 %343 }
 0x109   : > { %v306_v9 = vpop.xlane.xlu0 %305  ;;  %v401_v28 = vmul.f32 0.0078125, %v344_v7  ;;  %v644_v7 = vld [vmem:[%s2386_s2 + $0x8] sm:$0xff] }
 0x10a   : > { %v510_v11 = vperm.slane %v306_v9, %v1853_v18 }
 0x10b   : > { %v585_v36 = vperm.slane %v401_v28, %v1933_v26 }
 0x10c   : > { %v1922_v12 = vsel %vm472_vm2, %v510_v11, %v509_v43  ;;  %v643_v11 = vld [vmem:[%s2386_s2] sm:$0xff] }
 0x10d   : > { %v586_v31 = vsel %vm484_vm5, %v585_v36, %v584_v55  ;;  %v647_v55 = vld [vmem:[%s2386_s2 + $0x20] sm:$0xff] }
 0x110   : > { %v374_v14 = vpop.xlane.xlu1 %373  ;;  %v1924_v16 = vpop.xlane.xlu2 %387 }
 0x111   : > { %v360_v20 = vpop.xlane.xlu0 %359  ;;  %v416_v9 = vmul.f32 0.0078125, %v374_v14 }
 0x112   : > { %v409_v32 = vmul.f32 0.0078125, %v360_v20 }
 0x113   : > { %v613_v28 = vperm.slane %v416_v9, %v1896_v45 }
 0x114   : > { %v600_v37 = vperm.slane %v409_v32, %v1933_v26 }
 0x116   : > { %v601_v49 = vsel %vm484_vm5, %v600_v37, %v599_v53  ;;  %v648_v53 = vld [vmem:[%s2386_s2 + $0x28] sm:$0xff] }
 0x117   : > { %665 = vmatpush.msra.mxu0 %v648_v53 }
 0x118   : > { %v1926_v22 = vpop.xlane.xlu1 %293  ;;  %v1928_v23 = vpop.xlane.xlu2 %307 }
 0x119   : > { %v1930_v25 = vpop.xlane.xlu0 %277  ;;  %666 = vmatpush.msra.mxu0 %v647_v55  ;;  %v423_v55 = vmul.f32 0.0078125, %v1924_v16 }
 0x11b   : > { %667 = vmatpush.msra.mxu0 %v646_v58  ;;  %v512_v58 = vperm.slane %v1928_v23, %v1874_v59  ;;  %v626_v16 = vperm.slane %v423_v55, %v1874_v59 }
 0x11d   : > { %668 = vmatpush.msra.mxu0 %v645_v3 }
 0x11f   : > { %669 = vmatpush.msra.mxu0 %v644_v7 }
 0x120   : > { %v346_v38 = vpop.xlane.xlu1 %345  ;;  %v362_v39 = vpop.xlane.xlu2 %361 }
 0x121   : > { %v402_v40 = vmul.f32 0.0078125, %v346_v38  ;;  %v410_v41 = vmul.f32 0.0078125, %v362_v39  ;;  %v1940_v43 = vpop.xlane.xlu0 %321  ;;  %670 = vmatpush.msra.mxu0 %v643_v11 }
 0x123   : > { %v587_v46 = vperm.slane %v402_v40, %v1936_v35  ;;  %v602_v48 = vperm.slane %v410_v41, %v1936_v35  ;;  %v614_v40 = vsel %vm480_vm4, %v613_v28, %v1903_v54 }
 0x125   : > { %v588_v50 = vsel %vm488_vm6, %v587_v46, %v586_v31  ;;  %v603_v51 = vsel %vm488_vm6, %v602_v48, %v601_v49  ;;  %v499_v46 = vperm.slane %v1926_v22, %v1896_v45  ;;  %v479_v48 = vperm.slane %v1930_v25, %v1896_v45 }
 0x126   : > { %v635_v33 = vsel %vm634_vm7, %v603_v51, %v588_v50 }
 0x127   : > { %v500_v57 = vsel %vm480_vm4, %v499_v46, %v1912_v0  ;;  %v481_v22 = vsel %vm480_vm4, %v479_v48, %v1909_v63 }
 0x128   : > { %v390_v47 = vpop.xlane.xlu1 %389  ;;  %v280_v52 = vpop.xlane.xlu2 %279 }
 0x129   : > { %v376_v56 = vpop.xlane.xlu0 %375  ;;  %v483_v49 = vperm.slane %v280_v52, %v1933_v26 }
 0x12a   : > { %v417_v20 = vmul.f32 0.0078125, %v376_v56 }
 0x12b   : > { %v485_v52 = vsel %vm484_vm5, %v483_v49, %v481_v22 }
 0x12c   : > { %v615_v37 = vperm.slane %v417_v20, %v1933_v26  ;;  %v513_v20 = vsel %vm476_vm3, %v512_v58, %v1922_v12  ;;  %v627_v12 = vsel %vm476_vm3, %v626_v16, %v1916_v4 }
 0x12e   : > { %v616_v41 = vsel %vm484_vm5, %v615_v37, %v614_v40  ;;  %v525_v40 = vperm.slane %v1940_v43, %v1853_v18 }
 0x130   : > { %v310_v60 = vpop.xlane.xlu1 %309  ;;  %v1963_v61 = vpop.xlane.xlu2 %323 }
 0x131   : > { %v296_v62 = vpop.xlane.xlu0 %295  ;;  %v514_v63 = vperm.slane %v310_v60, %v1896_v45  ;;  %v527_v49 = vperm.slane %v1963_v61, %v1874_v59 }
 0x132   : > { %v501_v50 = vperm.slane %v296_v62, %v1933_v26  ;;  %v424_v62 = vmul.f32 0.0078125, %v390_v47 }
 0x133   : > { %v515_v23 = vsel %vm480_vm4, %v514_v63, %v513_v20 }
 0x134   : > { %v628_v28 = vperm.slane %v424_v62, %v1896_v45 }
 0x138   : > { %v392_v32 = vpop.xlane.xlu1 %391  ;;  %v282_v36 = vpop.xlane.xlu2 %281 }
 0x139   : > { %v378_v38 = vpop.xlane.xlu0 %377  ;;  %v487_v54 = vperm.slane %v282_v36, %v1936_v35  ;;  %v425_v7 = vmul.f32 0.0078125, %v392_v32 }
 0x13a   : > { %v418_v39 = vmul.f32 0.0078125, %v378_v38 }
 0x13b   : > { %v489_v3 = vsel %vm488_vm6, %v487_v54, %v485_v52  ;;  %v630_v47 = vperm.slane %v425_v7, %v1933_v26 }
 0x13c   : > { %v617_v14 = vperm.slane %v418_v39, %v1936_v35  ;;  %v523_v39 = vperm.slane %v1918_v6, %v1824_v34 }
 0x13e   : > { %v618_v31 = vsel %vm488_vm6, %v617_v14, %v616_v41  ;;  %v629_v41 = vsel %vm480_vm4, %v628_v28, %v627_v12  ;;  %v524_v18 = vsel %vm468_vm1, %v523_v39, %v1892_v42 }
 0x13f   : > { %v637_v51 = vsel %vm636_vm8, %v618_v31, %v635_v33  ;;  %v502_v33 = vsel %vm484_vm5, %v501_v50, %v500_v57  ;;  %v631_v34 = vsel %vm484_vm5, %v630_v47, %v629_v41  ;;  %v526_v54 = vsel %vm472_vm2, %v525_v40, %v524_v18 }
 0x140   : > { %v312_v44 = vpop.xlane.xlu1 %311  ;;  %v326_v53 = vpop.xlane.xlu2 %325 }
 0x141   : > { %v298_v56 = vpop.xlane.xlu0 %297  ;;  %v516_v11 = vperm.slane %v312_v44, %v1933_v26  ;;  %v529_v6 = vperm.slane %v326_v53, %v1896_v45  ;;  %v528_v44 = vsel %vm476_vm3, %v527_v49, %v526_v54 }
 0x142   : > { %v503_v25 = vperm.slane %v298_v56, %v1936_v35 }
 0x143   : > { %v517_v60 = vsel %vm484_vm5, %v516_v11, %v515_v23  ;;  %v530_v57 = vsel %vm480_vm4, %v529_v6, %v528_v44 }
 0x144   : > { %v504_v0 = vsel %vm488_vm6, %v503_v25, %v502_v33 }
 0x145   : > { %v536_v9 = vsel %vm535_vm9, %v504_v0, %v489_v3 }
 0x148   : > { %v314_v36 = vpop.xlane.xlu1 %313  ;;  %v328_v46 = vpop.xlane.xlu2 %327 }
 0x149   : > { %v518_v37 = vperm.slane %v314_v36, %v1936_v35  ;;  %v394_v38 = vpop.xlane.xlu0 %393  ;;  %v531_v43 = vperm.slane %v328_v46, %v1933_v26  ;;  %v676_v26 = vld [vmem:[%s2387_s3] sm:$0xf] }
 0x14a   : > { %v426_v32 = vmul.f32 0.0078125, %v394_v38  ;;  %1334 = vmatpush.msk.msra.mxu1 %vm641_vm13, %v676_v26 }
 0x14b   : > { %v519_v14 = vsel %vm488_vm6, %v518_v37, %v517_v60  ;;  %v532_v45 = vsel %vm484_vm5, %v531_v43, %v530_v57 }
 0x14c   : > { %v632_v48 = vperm.slane %v426_v32, %v1936_v35  ;;  %v538_v31 = vsel %vm537_vm10, %v519_v14, %v536_v9 }
 0x14e   : > { %v633_v4 = vsel %vm488_vm6, %v632_v48, %v631_v34 }
 0x14f   : > { %v639_v50 = vsel %vm638_vm11, %v633_v4, %v637_v51 }
 0x151   : > { %v330_v56 = vpop.xlane.xlu0 %329 }
 0x152   : > { %v533_v59 = vperm.slane %v330_v56, %v1936_v35  ;;  %v2037_v35 = vshrl.u32 %v459_v27, 7 }
 0x154   : > { %v534_v61 = vsel %vm488_vm6, %v533_v59, %v532_v45  ;;  %1413 = vset.pattern.permute.xlu1 %v2037_v35  ;;  %v2041_v25 = vadd.s32 16, %v2037_v35  ;;  %v2044_v55 = vadd.s32 8, %v2037_v35  ;;  %v748_v37 = vadd.s32 24, %v2037_v35 }
 0x155   : > { %v540_v42 = vsel %vm539_vm12, %v534_v61, %v538_v31  ;;  %v754_v38 = vadd.s32 32, %v2037_v35  ;;  %v2052_v32 = vadd.s32 48, %v2037_v35  ;;  %v760_v39 = vadd.s32 40, %v2037_v35 }
 0x156   : > { %v642_v22 = vsel %vm641_vm13, %v540_v42, %v639_v50  ;;  %1415 = vset.pattern.permute.xlu0 %v2041_v25  ;;  %1414 = vset.pattern.permute.xlu2 %v2044_v55  ;;  %v2058_v12 = vadd.s32 56, %v2037_v35 }
 0x157   : > { %1333 = vmatmul.msk.f32.vlgmr.msra.gmra.mxu0 %vm651_vm14, %v642_v22 }
 0x1d4   : > { %v672_v51 = vpop.f32.mrf.mxu0 }
 0x1d5   : > { %v675_v53 = vmax.f32 %v672_v51, 0.0 }
 0x1d7   : > { %1335 = vmatmul.msk.f32.vlgmr.msra.gmra.mxu1 %vm677_vm15, %v675_v53 }
 0x254   : > { %v701_v52 = vpop.f32.mrf.mxu1 }
 0x255   : > { %v705_v33 = vrot.slane %v701_v52, 4 }
 0x257   : > { %v707_v58 = vadd.f32 %v705_v33, %v701_v52 }
 0x259   : > { %v1336_v62 = vmul.f32 -1.442695, %v707_v58 }
 0x25b   : > { %1443 = vpow2.f32 %v1336_v62 }
 0x261   : > { %v1444_v3 = vpop.eup %1443 }
 0x262   : > { %v711_v27 = vadd.f32 1.0, %v1444_v3 }
 0x264   : > { %1445 = vrcp.f32 %v711_v27  ;;  %v723_v9 = vand.u32 2147483648, %v711_v27  ;;  %v721_v16 = vand.u32 2147483647, %v711_v27  ;;  %vm717_vm1 = vweird.f32 %v711_v27 }
 0x266   : > { %v724_v28 = vor.u32 1.1754944e-38, %v723_v9  ;;  %vm722_vm3 = vcmp.eq.f32.partialorder %v721_v16, 8.507059e+37  ;;  %v2128_v9 = vstv %s1337_s23 }
 0x26a   : > { %v1446_v0 = vpop.eup %1445 }
 0x26b   : > { %v713_v63 = vmul.f32 %v1446_v0, %v711_v27  ;;  %vm718_vm0 = vweird.f32 %v1446_v0 }
 0x26c   : > { %vm719_vm2 = vmor %vm717_vm1, %vm718_vm0 }
 0x26d   : > { %v714_v7 = vsub.f32 1.0, %v713_v63 }
 0x26f   : > { %v715_v11 = vmul.f32 %v1446_v0, %v714_v7  ;;  %v2126_v7 = vstv %s1063_s22 }
 0x271   : > { %v716_v20 = vadd.f32 %v1446_v0, %v715_v11 }
 0x273   : > { %v720_v36 = vsel %vm719_vm2, %v1446_v0, %v716_v20 }
 0x274   : > { %v725_v23 = vsel %vm722_vm3, %v724_v28, %v720_v36 }
 0x275   : > { %v727_v47 = vperm.slane %v725_v23, 0  ;;  %v776_v60 = vperm.slane %v725_v23, 1  ;;  %v2063_v40 = vperm.slane %v725_v23, 2  ;;  %v2067_v14 = vperm.slane %v725_v23, 3 }
 0x277   : > { %744 = vperm.xlu0 %1415, %v727_v47   ;;  %738 = vperm.xlu2 %1414, %v727_v47  }
 0x278   : > { %732 = vperm.xlu1 %1413, %v727_v47  }
 0x27f   : > { %1422 = vset.pattern.permute.xlu0 %v2044_v55  ;;  %1416 = vset.pattern.permute.xlu2 %v748_v37 }
 0x280   : > { %1417 = vset.pattern.permute.xlu1 %v754_v38 }
 0x287   : > { %787 = vperm.xlu0 %1422, %v776_v60   ;;  %750 = vperm.xlu2 %1416, %v727_v47  }
 0x288   : > { %756 = vperm.xlu1 %1417, %v727_v47  }
 0x28f   : > { %1427 = vset.pattern.permute.xlu0 %v2052_v32  ;;  %1418 = vset.pattern.permute.xlu2 %v760_v39 }
 0x290   : > { %1419 = vset.pattern.permute.xlu1 %v2052_v32 }
 0x297   : > { %817 = vperm.xlu0 %1427, %v776_v60   ;;  %762 = vperm.xlu2 %1418, %v727_v47  }
 0x298   : > { %768 = vperm.xlu1 %1419, %v727_v47  }
 0x29f   : > { %1430 = vset.pattern.permute.xlu0 %v2041_v25  ;;  %1420 = vset.pattern.permute.xlu2 %v2058_v12 }
 0x2a0   : > { %1421 = vset.pattern.permute.xlu1 %v2037_v35 }
 0x2a7   : > { %842 = vperm.xlu0 %1430, %v2063_v40   ;;  %774 = vperm.xlu2 %1420, %v727_v47  }
 0x2a8   : > { %781 = vperm.xlu1 %1421, %v776_v60  }
 0x2af   : > { %1435 = vset.pattern.permute.xlu0 %v754_v38  ;;  %1423 = vset.pattern.permute.xlu2 %v2041_v25 }
 0x2b0   : > { %1424 = vset.pattern.permute.xlu1 %v748_v37 }
 0x2b7   : > { %903 = vperm.xlu0 %1435, %v2067_v14   ;;  %793 = vperm.xlu2 %1423, %v776_v60  }
 0x2b8   : > { %799 = vperm.xlu1 %1424, %v776_v60  }
 0x2bf   : > { %1440 = vset.pattern.permute.xlu0 %v2058_v12  ;;  %1425 = vset.pattern.permute.xlu2 %v754_v38 }
 0x2c0   : > { %1426 = vset.pattern.permute.xlu1 %v760_v39 }
 0x2c7   : > { %823 = vperm.xlu0 %1440, %v776_v60   ;;  %805 = vperm.xlu2 %1425, %v776_v60  }
 0x2c8   : > { %811 = vperm.xlu1 %1426, %v776_v60  }
 0x2cf   : > { %1428 = vset.pattern.permute.xlu2 %v2037_v35 }
 0x2d0   : > { %1429 = vset.pattern.permute.xlu1 %v2044_v55 }
 0x2d1   : > { %v739_v41 = vpop.permute.xlu2 %738 }
 0x2d2   : > { %v2084_v49 = vmul.f32 %v739_v41, %v1754_v5 }
 0x2d7   : > { %830 = vperm.xlu2 %1428, %v2063_v40  }
 0x2d8   : > { %836 = vperm.xlu1 %1429, %v2063_v40  }
 0x2df   : > { %879 = vperm.xlu2 %1428, %v2067_v14  }
 0x2e0   : > { %885 = vperm.xlu1 %1429, %v2067_v14  }
 0x2e1   : > { %v751_v31 = vpop.permute.xlu2 %750 }
 0x2e2   : > { %v2098_v54 = vmul.f32 %v751_v31, %v1766_v10  ;;  %v1464_v31 = vld [vmem:[%s1736_s8 + $0x48] sm:$0xff] }
 0x2e7   : > { %1431 = vset.pattern.permute.xlu2 %v2041_v25 }
 0x2e8   : > { %1432 = vset.pattern.permute.xlu1 %v748_v37 }
 0x2e9   : > { %v745_v34 = vpop.permute.xlu0 %744 }
 0x2ea   : > { %v733_v46 = vpop.permute.xlu1 %732  ;;  %v2091_v18 = vmul.f32 %v745_v34, %v1744_v1 }
 0x2eb   : > { %v2081_v48 = vmul.f32 %v733_v46, %v1747_v2 }
 0x2ed   : > { %v955_v6 = vmax.f32 %v2081_v48, %v2084_v49  ;;  %v1007_v4 = vadd.f32 %v2084_v49, %v2081_v48 }
 0x2ef   : > { %891 = vperm.xlu2 %1431, %v2067_v14   ;;  %v956_v2 = vmax.f32 %v955_v6, %v2091_v18  ;;  %v1008_v5 = vadd.f32 %v1007_v4, %v2091_v18 }
 0x2f0   : > { %848 = vperm.xlu1 %1432, %v2063_v40  }
 0x2f1   : > { %v763_v50 = vpop.permute.xlu2 %762  ;;  %v957_v56 = vmax.f32 %v956_v2, %v2098_v54  ;;  %v1009_v1 = vadd.f32 %v1008_v5, %v2098_v54 }
 0x2f2   : > { %v2108_v45 = vmul.f32 %v763_v50, %v1790_v19 }
 0x2f7   : > { %1433 = vset.pattern.permute.xlu2 %v748_v37 }
 0x2f8   : > { %1434 = vset.pattern.permute.xlu1 %v754_v38 }
 0x2f9   : > { %v788_v16 = vpop.permute.xlu0 %787 }
 0x2fa   : > { %v757_v43 = vpop.permute.xlu1 %756  ;;  %v2142_v34 = vmul.f32 %v1464_v31, %v788_v16 }
 0x2fb   : > { %v2101_v44 = vmul.f32 %v757_v43, %v1778_v15  ;;  %v1465_v43 = vld [vmem:[%s1736_s8 + $0x50] sm:$0xff] }
 0x2fd   : > { %v958_v57 = vmax.f32 %v957_v56, %v2101_v44  ;;  %v1010_v59 = vadd.f32 %v1009_v1, %v2101_v44 }
 0x2ff   : > { %897 = vperm.xlu2 %1433, %v2067_v14   ;;  %v959_v10 = vmax.f32 %v958_v57, %v2108_v45  ;;  %v1011_v15 = vadd.f32 %v1010_v59, %v2108_v45 }
 0x300   : > { %854 = vperm.xlu1 %1434, %v2063_v40  }
 0x301   : > { %v775_v61 = vpop.permute.xlu2 %774 }
 0x302   : > { %v2116_v26 = vmul.f32 %v775_v61, %v1810_v29 }
 0x307   : > { %1436 = vset.pattern.permute.xlu2 %v760_v39 }
 0x308   : > { %1437 = vset.pattern.permute.xlu1 %v760_v39 }
 0x309   : > { %v818_v47 = vpop.permute.xlu0 %817 }
 0x30a   : > { %v769_v42 = vpop.permute.xlu1 %768 }
 0x30b   : > { %v2113_v22 = vmul.f32 %v769_v42, %v1798_v21 }
 0x30d   : > { %v960_v51 = vmax.f32 %v959_v10, %v2113_v22  ;;  %v1012_v53 = vadd.f32 %v1011_v15, %v2113_v22 }
 0x30f   : > { %v961_v35 = vmax.f32 %v960_v51, %v2116_v26  ;;  %v1013_v19 = vadd.f32 %v1012_v53, %v2116_v26  ;;  %860 = vperm.xlu2 %1436, %v2063_v40  }
 0x310   : > { %909 = vperm.xlu1 %1437, %v2067_v14  }
 0x311   : > { %v962_v25 = vrot.slane %v961_v35, 4  ;;  %v1014_v55 = vrot.slane %v1013_v19, 4  ;;  %v794_v41 = vpop.permute.xlu2 %793 }
 0x312   : > { %v2151_v2 = vmul.f32 %v1465_v43, %v794_v41 }
 0x313   : > { %v963_v21 = vmax.f32 %v961_v35, %v962_v25  ;;  %v1015_v52 = vadd.f32 %v1014_v55, %v1013_v19 }
 0x315   : > { %v964_v29 = vrot.slane %v963_v21, 2  ;;  %v1016_v33 = vrot.slane %v1015_v52, 2 }
 0x317   : > { %v965_v58 = vmax.f32 %v963_v21, %v964_v29  ;;  %v1017_v62 = vadd.f32 %v1016_v33, %v1015_v52  ;;  %1438 = vset.pattern.permute.xlu2 %v2052_v32 }
 0x318   : > { %1439 = vset.pattern.permute.xlu1 %v2052_v32  ;;  %v1463_v32 = vld [vmem:[%s1736_s8 + $0x40] sm:$0xff] }
 0x319   : > { %v966_v3 = vrot.slane %v965_v58, 1  ;;  %v1018_v27 = vrot.slane %v1017_v62, 1  ;;  %v2139_v46 = vpop.permute.xlu0 %842 }
 0x31a   : > { %v782_v37 = vpop.permute.xlu1 %781 }
 0x31b   : > { %v967_v0 = vmax.f32 %v965_v58, %v966_v3  ;;  %v1019_v63 = vadd.f32 %v1018_v27, %v1017_v62  ;;  %v2137_v39 = vmul.f32 %v1463_v32, %v782_v37  ;;  %v2173_v62 = vmul.f32 %v818_v47, %v1804_v24 }
 0x31d   : > { %v1059_v11 = vmul.f32 0.015625, %v1019_v63  ;;  %v1065_v20 = vmul.f32 %v2126_v7, %v967_v0  ;;  %v1020_v4 = vadd.f32 %v2142_v34, %v2137_v39 }
 0x31f   : > { %v1071_v28 = vmul.f32 %v2128_v9, %v1059_v11  ;;  %866 = vperm.xlu2 %1438, %v2063_v40  }
 0x320   : > { %915 = vperm.xlu1 %1439, %v2067_v14  }
 0x321   : > { %v1075_v36 = vadd.f32 %v1071_v28, %v1065_v20  ;;  %v806_v57 = vpop.permute.xlu2 %805 }
 0x323   : > { %v1338_v23 = vmul.f32 -1.442695, %v1075_v36 }
 0x325   : > { %1447 = vpow2.f32 %v1338_v23 }
 0x327   : > { %1441 = vset.pattern.permute.xlu2 %v2058_v12 }
 0x328   : > { %1442 = vset.pattern.permute.xlu1 %v2058_v12  ;;  %v968_v12 = vmax.f32 %v2137_v39, %v2142_v34 }
 0x32a   : > { %v800_v6 = vpop.permute.xlu1 %799  ;;  %v969_v1 = vmax.f32 %v968_v12, %v2151_v2 }
 0x32b   : > { %v1448_v38 = vpop.eup %1447  ;;  %v2154_v5 = vmul.f32 %v800_v6, %v1762_v8  ;;  %v2163_v8 = vmul.f32 %v806_v57, %v1774_v13 }
 0x32c   : > { %v1091_v60 = vadd.f32 1.0, %v1448_v38 }
 0x32d   : > { %v970_v61 = vmax.f32 %v969_v1, %v2154_v5 }
 0x32e   : > { %1449 = vrcp.f32 %v1091_v60  ;;  %v1106_v10 = vand.u32 2147483648, %v1091_v60  ;;  %v1104_v51 = vand.u32 2147483647, %v1091_v60  ;;  %vm1100_vm5 = vweird.f32 %v1091_v60 }
 0x32f   : > { %872 = vperm.xlu2 %1441, %v2063_v40   ;;  %v1021_v40 = vadd.f32 %v1020_v4, %v2151_v2  ;;  %v971_v19 = vmax.f32 %v970_v61, %v2163_v8 }
 0x330   : > { %921 = vperm.xlu1 %1442, %v2067_v14   ;;  %v2158_v14 = vpop.permute.xlu0 %903  ;;  %v1107_v21 = vor.u32 1.1754944e-38, %v1106_v10  ;;  %vm1105_vm7 = vcmp.eq.f32.partialorder %v1104_v51, 8.507059e+37 }
 0x331   : > { %v1022_v42 = vadd.f32 %v1021_v40, %v2154_v5  ;;  %v831_v12 = vpop.permute.xlu2 %830 }
 0x333   : > { %v1023_v25 = vadd.f32 %v1022_v42, %v2163_v8 }
 0x334   : > { %v1450_v50 = vpop.eup %1449 }
 0x335   : > { %v1096_v56 = vmul.f32 %v1450_v50, %v1091_v60  ;;  %vm1101_vm4 = vweird.f32 %v1450_v50 }
 0x336   : > { %vm1102_vm6 = vmor %vm1100_vm5, %vm1101_vm4 }
 0x337   : > { %v1097_v59 = vsub.f32 1.0, %v1096_v56 }
 0x339   : > { %v1098_v15 = vmul.f32 %v1450_v50, %v1097_v59  ;;  %v824_v58 = vpop.permute.xlu0 %823  ;;  %v2204_v56 = vpop.permute.xlu2 %879 }
 0x33a   : > { %v812_v53 = vpop.permute.xlu1 %811  ;;  %v2186_v24 = vmul.f32 %v824_v58, %v1813_v30 }
 0x33b   : > { %v1099_v35 = vadd.f32 %v1450_v50, %v1098_v15  ;;  %v2168_v55 = vmul.f32 %v812_v53, %v1786_v17 }
 0x33d   : > { %v1103_v52 = vsel %vm1102_vm6, %v1450_v50, %v1099_v35  ;;  %v972_v29 = vmax.f32 %v971_v19, %v2168_v55  ;;  %v1024_v13 = vadd.f32 %v1023_v25, %v2168_v55 }
 0x33e   : > { %v1108_v33 = vsel %vm1105_vm7, %v1107_v21, %v1103_v52 }
 0x33f   : > { %v1155_v3 = vmul.f32 %v1108_v33, %v2081_v48  ;;  %v1156_v27 = vmul.f32 %v1108_v33, %v2084_v49  ;;  %v1157_v17 = vmul.f32 %v1108_v33, %v2091_v18  ;;  %v1158_v0 = vmul.f32 %v1108_v33, %v2098_v54 }
 0x340   : > { %v1159_v63 = vmul.f32 %v1108_v33, %v2101_v44  ;;  %v973_v48 = vmax.f32 %v972_v29, %v2173_v62  ;;  %v1025_v49 = vadd.f32 %v1024_v13, %v2173_v62  ;;  %v1160_v18 = vmul.f32 %v1108_v33, %v2108_v45 }
 0x341   : > { %1187 = vst [vmem:[%s2182_s30] sm:$0xff] %v1155_v3  ;;  %v1161_v54 = vmul.f32 %v1108_v33, %v2113_v22  ;;  %v1162_v16 = vmul.f32 %v1108_v33, %v2116_v26 }
 0x342   : > { %1188 = vst [vmem:[%s2182_s30 + $0x8] sm:$0xff] %v1156_v27  ;;  %v974_v44 = vmax.f32 %v973_v48, %v2186_v24  ;;  %v1026_v11 = vadd.f32 %v1025_v49, %v2186_v24  ;;  %v1469_v49 = vld [vmem:[%s1736_s8 + $0x98] sm:$0xff] }
 0x343   : > { %1189 = vst [vmem:[%s2182_s30 + $0x10] sm:$0xff] %v1157_v17 }
 0x344   : > { %1190 = vst [vmem:[%s2182_s30 + $0x18] sm:$0xff] %v1158_v0  ;;  %v975_v30 = vrot.slane %v974_v44, 4  ;;  %v1027_v20 = vrot.slane %v1026_v11, 4 }
 0x345   : > { %1191 = vst [vmem:[%s2182_s30 + $0x20] sm:$0xff] %v1159_v63 }
 0x346   : > { %1192 = vst [vmem:[%s2182_s30 + $0x28] sm:$0xff] %v1160_v18  ;;  %v976_v28 = vmax.f32 %v974_v44, %v975_v30  ;;  %v1028_v36 = vadd.f32 %v1027_v20, %v1026_v11  ;;  %v1470_v11 = vld [vmem:[%s1736_s8 + $0xa0] sm:$0xff] }
 0x347   : > { %1193 = vst [vmem:[%s2182_s30 + $0x30] sm:$0xff] %v1161_v54 }
 0x348   : > { %1194 = vst [vmem:[%s2182_s30 + $0x38] sm:$0xff] %v1162_v16  ;;  %v977_v45 = vrot.slane %v976_v28, 2  ;;  %v1029_v23 = vrot.slane %v1028_v36, 2 }
 0x349   : > { %v2206_v59 = vpop.permute.xlu2 %891 }
 0x34a   : > { %v978_v47 = vmax.f32 %v976_v28, %v977_v45  ;;  %v1030_v22 = vadd.f32 %v1029_v23, %v1028_v36  ;;  %v837_v1 = vpop.permute.xlu1 %836  ;;  %v1471_v45 = vld [vmem:[%s1736_s8 + $0xa8] sm:$0xff] }
 0x34c   : > { %v979_v37 = vrot.slane %v978_v47, 1  ;;  %v1031_v38 = vrot.slane %v1030_v22, 1 }
 0x34e   : > { %v980_v60 = vmax.f32 %v978_v47, %v979_v37  ;;  %v1032_v32 = vadd.f32 %v1031_v38, %v1030_v22  ;;  %v1472_v47 = vld [vmem:[%s1736_s8 + $0xb0] sm:$0xff] }
 0x350   : > { %v1060_v41 = vmul.f32 0.015625, %v1032_v32  ;;  %v1066_v26 = vmul.f32 %v2126_v7, %v980_v60 }
 0x352   : > { %v1072_v31 = vmul.f32 %v2128_v9, %v1060_v41  ;;  %v2208_v51 = vpop.permute.xlu1 %885 }
 0x354   : > { %v1076_v6 = vadd.f32 %v1072_v31, %v1066_v26  ;;  %v1473_v26 = vld [vmem:[%s1736_s8 + $0xb8] sm:$0xff] }
 0x356   : > { %v1339_v4 = vmul.f32 -1.442695, %v1076_v6 }
 0x358   : > { %1451 = vpow2.f32 %v1339_v4 }
 0x359   : > { %v2210_v25 = vpop.permute.xlu2 %897 }
 0x35e   : > { %v1452_v43 = vpop.eup %1451 }
 0x35f   : > { %v1092_v50 = vadd.f32 1.0, %v1452_v43 }
 0x361   : > { %1453 = vrcp.f32 %v1092_v50  ;;  %v1121_v42 = vand.u32 2147483648, %v1092_v50  ;;  %v1119_v15 = vand.u32 2147483647, %v1092_v50  ;;  %vm1115_vm9 = vweird.f32 %v1092_v50 }
 0x362   : > { %v849_v3 = vpop.permute.xlu1 %848 }
 0x363   : > { %v1122_v35 = vor.u32 1.1754944e-38, %v1121_v42  ;;  %vm1120_vm11 = vcmp.eq.f32.partialorder %v1119_v15, 8.507059e+37  ;;  %v2243_v18 = vmul.f32 %v1469_v49, %v849_v3  ;;  %v1475_v15 = vld [vmem:[%s1736_s8 + $0xc0] sm:$0xff] }
 0x367   : > { %v1454_v40 = vpop.eup %1453 }
 0x368   : > { %v1111_v57 = vmul.f32 %v1454_v40, %v1092_v50  ;;  %vm1116_vm8 = vweird.f32 %v1454_v40 }
 0x369   : > { %vm1117_vm10 = vmor %vm1115_vm9, %vm1116_vm8 }
 0x36a   : > { %v1112_v61 = vsub.f32 1.0, %v1111_v57 }
 0x36c   : > { %v1113_v10 = vmul.f32 %v1454_v40, %v1112_v61 }
 0x36e   : > { %v1114_v53 = vadd.f32 %v1454_v40, %v1113_v10 }
 0x370   : > { %v1118_v19 = vsel %vm1117_vm10, %v1454_v40, %v1114_v53  ;;  %v1474_v40 = vld [vmem:[%s1736_s8 + $0xc8] sm:$0xff]  ;;  %v2275_v53 = vmul.f32 %v1475_v15, %v2204_v56 }
 0x371   : > { %v1123_v21 = vsel %vm1120_vm11, %v1122_v35, %v1118_v19  ;;  %v2271_v57 = vmul.f32 %v1474_v40, %v2208_v51  ;;  %v1476_v51 = vld [vmem:[%s1736_s8 + $0xd0] sm:$0xff] }
 0x372   : > { %v1163_v52 = vmul.f32 %v1123_v21, %v2137_v39  ;;  %v1164_v29 = vmul.f32 %v1123_v21, %v2142_v34  ;;  %v1165_v13 = vmul.f32 %v1123_v21, %v2151_v2  ;;  %v1166_v33 = vmul.f32 %v1123_v21, %v2154_v5  ;;  %v1466_v34 = vld [vmem:[%s1736_s8 + $0x88] sm:$0xff]  ;;  %v861_v5 = vpop.permute.xlu2 %860  ;;  %v855_v63 = vpop.permute.xlu1 %854 }
 0x373   : > { %v1167_v58 = vmul.f32 %v1123_v21, %v2163_v8  ;;  %v1168_v27 = vmul.f32 %v1123_v21, %v2168_v55  ;;  %v1169_v17 = vmul.f32 %v1123_v21, %v2173_v62  ;;  %v1170_v39 = vmul.f32 %v1123_v21, %v2186_v24  ;;  %v1467_v8 = vld [vmem:[%s1736_s8 + $0x80] sm:$0xff]  ;;  %v1468_v24 = vld [vmem:[%s1736_s8 + $0x90] sm:$0xff] }
 0x374   : > { %1195 = vst [vmem:[%s2182_s30 + $0x40] sm:$0xff] %v1163_v52  ;;  %v2225_v2 = vmul.f32 %v1466_v34, %v837_v1  ;;  %v2229_v0 = vmul.f32 %v1467_v8, %v831_v12  ;;  %v2240_v48 = vmul.f32 %v1468_v24, %v2139_v46  ;;  %v2248_v16 = vmul.f32 %v1470_v11, %v855_v63  ;;  %v1478_v63 = vld [vmem:[%s1736_s8 + $0xe0] sm:$0xff]  ;;  %v1479_v24 = vld [vmem:[%s1736_s8 + $0xe8] sm:$0xff] }
 0x375   : > { %1196 = vst [vmem:[%s2182_s30 + $0x48] sm:$0xff] %v1164_v29  ;;  %v2255_v23 = vmul.f32 %v1471_v45, %v861_v5  ;;  %v994_v21 = vmax.f32 %v2275_v53, %v2271_v57  ;;  %v1046_v52 = vadd.f32 %v2271_v57, %v2275_v53 }
 0x376   : > { %1197 = vst [vmem:[%s2182_s30 + $0x50] sm:$0xff] %v1165_v13  ;;  %v981_v55 = vmax.f32 %v2229_v0, %v2225_v2  ;;  %v1033_v62 = vadd.f32 %v2225_v2, %v2229_v0 }
 0x377   : > { %1198 = vst [vmem:[%s2182_s30 + $0x58] sm:$0xff] %v1166_v33  ;;  %v2283_v33 = vmul.f32 %v1476_v51, %v2206_v59 }
 0x378   : > { %1199 = vst [vmem:[%s2182_s30 + $0x60] sm:$0xff] %v1167_v58  ;;  %v982_v54 = vmax.f32 %v981_v55, %v2240_v48  ;;  %v1034_v44 = vadd.f32 %v1033_v62, %v2240_v48  ;;  %v1477_v58 = vld [vmem:[%s1736_s8 + $0xd8] sm:$0xff] }
 0x379   : > { %1200 = vst [vmem:[%s2182_s30 + $0x68] sm:$0xff] %v1168_v27  ;;  %v2287_v56 = vmul.f32 %v1477_v58, %v2210_v25  ;;  %v2297_v25 = vmul.f32 %v1478_v63, %v2158_v14 }
 0x37a   : > { %1201 = vst [vmem:[%s2182_s30 + $0x70] sm:$0xff] %v1169_v17  ;;  %v867_v30 = vpop.permute.xlu2 %866  ;;  %v983_v20 = vmax.f32 %v982_v54, %v2243_v18  ;;  %v1035_v28 = vadd.f32 %v1034_v44, %v2243_v18  ;;  %v995_v17 = vmax.f32 %v994_v21, %v2283_v33 }
 0x37b   : > { %1202 = vst [vmem:[%s2182_s30 + $0x78] sm:$0xff] %v1170_v39  ;;  %v2258_v22 = vmul.f32 %v1472_v47, %v867_v30  ;;  %v1047_v39 = vadd.f32 %v1046_v52, %v2283_v33  ;;  %v1480_v30 = vld [vmem:[%s1736_s8 + $0xf0] sm:$0xff] }
 0x37c   : > { %v984_v36 = vmax.f32 %v983_v20, %v2248_v16  ;;  %v1036_v46 = vadd.f32 %v1035_v28, %v2248_v16  ;;  %v996_v8 = vmax.f32 %v995_v17, %v2287_v56 }
 0x37d   : > { %v1048_v55 = vadd.f32 %v1047_v39, %v2287_v56 }
 0x37e   : > { %v985_v37 = vmax.f32 %v984_v36, %v2255_v23  ;;  %v1037_v38 = vadd.f32 %v1036_v46, %v2255_v23  ;;  %v997_v44 = vmax.f32 %v996_v8, %v2297_v25 }
 0x37f   : > { %v1049_v11 = vadd.f32 %v1048_v55, %v2297_v25 }
 0x380   : > { %v986_v32 = vmax.f32 %v985_v37, %v2258_v22  ;;  %v1038_v41 = vadd.f32 %v1037_v38, %v2258_v22  ;;  %v1481_v37 = vld [vmem:[%s1736_s8 + $0xf8] sm:$0xff] }
 0x382   : > { %v910_v61 = vpop.permute.xlu1 %909 }
 0x383   : > { %v2300_v49 = vmul.f32 %v1479_v24, %v910_v61 }
 0x385   : > { %v998_v36 = vmax.f32 %v997_v44, %v2300_v49  ;;  %v1050_v46 = vadd.f32 %v1049_v11, %v2300_v49 }
 0x389   : > { %v873_v60 = vpop.permute.xlu2 %872 }
 0x38a   : > { %v2265_v31 = vmul.f32 %v1473_v26, %v873_v60 }
 0x38c   : > { %v987_v6 = vmax.f32 %v986_v32, %v2265_v31  ;;  %v1039_v12 = vadd.f32 %v1038_v41, %v2265_v31 }
 0x38e   : > { %v988_v4 = vrot.slane %v987_v6, 4  ;;  %v1040_v43 = vrot.slane %v1039_v12, 4 }
 0x390   : > { %v989_v50 = vmax.f32 %v987_v6, %v988_v4  ;;  %v1041_v1 = vadd.f32 %v1040_v43, %v1039_v12 }
 0x392   : > { %v990_v42 = vrot.slane %v989_v50, 2  ;;  %v1042_v10 = vrot.slane %v1041_v1, 2  ;;  %v916_v5 = vpop.permute.xlu1 %915 }
 0x393   : > { %v2305_v20 = vmul.f32 %v1480_v30, %v916_v5 }
 0x394   : > { %v991_v35 = vmax.f32 %v989_v50, %v990_v42  ;;  %v1043_v19 = vadd.f32 %v1042_v10, %v1041_v1 }
 0x395   : > { %v999_v14 = vmax.f32 %v998_v36, %v2305_v20  ;;  %v1051_v47 = vadd.f32 %v1050_v46, %v2305_v20 }
 0x396   : > { %v992_v29 = vrot.slane %v991_v35, 1  ;;  %v1044_v13 = vrot.slane %v1043_v19, 1 }
 0x398   : > { %v993_v3 = vmax.f32 %v991_v35, %v992_v29  ;;  %v1045_v27 = vadd.f32 %v1044_v13, %v1043_v19 }
 0x39a   : > { %v1061_v34 = vmul.f32 0.015625, %v1045_v27  ;;  %v1067_v59 = vmul.f32 %v2126_v7, %v993_v3 }
 0x39c   : > { %v1073_v62 = vmul.f32 %v2128_v9, %v1061_v34 }
 0x39e   : > { %v1077_v54 = vadd.f32 %v1073_v62, %v1067_v59 }
 0x3a0   : > { %v1340_v28 = vmul.f32 -1.442695, %v1077_v54 }
 0x3a2   : > { %1455 = vpow2.f32 %v1340_v28  ;;  %v922_v45 = vpop.permute.xlu1 %921 }
 0x3a3   : > { %v2312_v38 = vmul.f32 %v1481_v37, %v922_v45 }
 0x3a5   : > { %v1000_v60 = vmax.f32 %v999_v14, %v2312_v38  ;;  %v1052_v32 = vadd.f32 %v1051_v47, %v2312_v38 }
 0x3a7   : > { %v1001_v41 = vrot.slane %v1000_v60, 4  ;;  %v1053_v26 = vrot.slane %v1052_v32, 4 }
 0x3a8   : > { %v1456_v6 = vpop.eup %1455 }
 0x3a9   : > { %v1093_v12 = vadd.f32 1.0, %v1456_v6  ;;  %v1002_v4 = vmax.f32 %v1000_v60, %v1001_v41  ;;  %v1054_v43 = vadd.f32 %v1053_v26, %v1052_v32 }
 0x3ab   : > { %1457 = vrcp.f32 %v1093_v12  ;;  %v1003_v50 = vrot.slane %v1002_v4, 2  ;;  %v1055_v1 = vrot.slane %v1054_v43, 2  ;;  %v1134_v13 = vand.u32 2147483647, %v1093_v12 }
 0x3ac   : > { %v1136_v51 = vand.u32 2147483648, %v1093_v12  ;;  %vm1130_vm13 = vweird.f32 %v1093_v12 }
 0x3ad   : > { %v1004_v40 = vmax.f32 %v1002_v4, %v1003_v50  ;;  %v1056_v61 = vadd.f32 %v1055_v1, %v1054_v43  ;;  %vm1135_vm15 = vcmp.eq.f32.partialorder %v1134_v13, 8.507059e+37 }
 0x3ae   : > { %v1137_v34 = vor.u32 1.1754944e-38, %v1136_v51 }
 0x3af   : > { %v1005_v42 = vrot.slane %v1004_v40, 1  ;;  %v1057_v10 = vrot.slane %v1056_v61, 1 }
 0x3b1   : > { %v1458_v15 = vpop.eup %1457  ;;  %v1006_v19 = vmax.f32 %v1004_v40, %v1005_v42  ;;  %v1058_v21 = vadd.f32 %v1057_v10, %v1056_v61 }
 0x3b2   : > { %v1126_v35 = vmul.f32 %v1458_v15, %v1093_v12  ;;  %vm1131_vm12 = vweird.f32 %v1458_v15 }
 0x3b3   : > { %v1062_v29 = vmul.f32 0.015625, %v1058_v21  ;;  %v1068_v3 = vmul.f32 %v2126_v7, %v1006_v19  ;;  %vm1132_vm14 = vmor %vm1130_vm13, %vm1131_vm12 }
 0x3b4   : > { %v1127_v52 = vsub.f32 1.0, %v1126_v35 }
 0x3b5   : > { %v1074_v27 = vmul.f32 %v2128_v9, %v1062_v29 }
 0x3b6   : > { %v1128_v58 = vmul.f32 %v1458_v15, %v1127_v52 }
 0x3b7   : > { %v1078_v39 = vadd.f32 %v1074_v27, %v1068_v3 }
 0x3b8   : > { %v1129_v17 = vadd.f32 %v1458_v15, %v1128_v58 }
 0x3b9   : > { %v1341_v8 = vmul.f32 -1.442695, %v1078_v39 }
 0x3ba   : > { %v1133_v5 = vsel %vm1132_vm14, %v1458_v15, %v1129_v17 }
 0x3bb   : > { %v1138_v55 = vsel %vm1135_vm15, %v1137_v34, %v1133_v5  ;;  %1459 = vpow2.f32 %v1341_v8 }
 0x3bc   : > { %v1171_v59 = vmul.f32 %v1138_v55, %v2229_v0  ;;  %v1172_v7 = vmul.f32 %v1138_v55, %v2225_v2  ;;  %v1173_v9 = vmul.f32 %v1138_v55, %v2240_v48  ;;  %v1174_v62 = vmul.f32 %v1138_v55, %v2243_v18 }
 0x3bd   : > { %v1175_v63 = vmul.f32 %v1138_v55, %v2248_v16  ;;  %v1176_v24 = vmul.f32 %v1138_v55, %v2255_v23  ;;  %v1177_v54 = vmul.f32 %v1138_v55, %v2258_v22  ;;  %v1178_v0 = vmul.f32 %v1138_v55, %v2265_v31 }
 0x3be   : > { %1203 = vst [vmem:[%s2182_s30 + $0x80] sm:$0xff] %v1171_v59 }
 0x3bf   : > { %1204 = vst [vmem:[%s2182_s30 + $0x88] sm:$0xff] %v1172_v7 }
 0x3c0   : > { %1205 = vst [vmem:[%s2182_s30 + $0x90] sm:$0xff] %v1173_v9 }
 0x3c1   : > { %1206 = vst [vmem:[%s2182_s30 + $0x98] sm:$0xff] %v1174_v62  ;;  %v1460_v2 = vpop.eup %1459 }
 0x3c2   : > { %1207 = vst [vmem:[%s2182_s30 + $0xa0] sm:$0xff] %v1175_v63  ;;  %v1094_v48 = vadd.f32 1.0, %v1460_v2 }
 0x3c3   : > { %1208 = vst [vmem:[%s2182_s30 + $0xa8] sm:$0xff] %v1176_v24 }
 0x3c4   : > { %1209 = vst [vmem:[%s2182_s30 + $0xb0] sm:$0xff] %v1177_v54  ;;  %1461 = vrcp.f32 %v1094_v48  ;;  %v1151_v11 = vand.u32 2147483648, %v1094_v48  ;;  %v1149_v22 = vand.u32 2147483647, %v1094_v48  ;;  %vm1145_vm1 = vweird.f32 %v1094_v48 }
 0x3c5   : > { %1210 = vst [vmem:[%s2182_s30 + $0xb8] sm:$0xff] %v1178_v0 }
 0x3c6   : > { %v1152_v31 = vor.u32 1.1754944e-38, %v1151_v11  ;;  %vm1150_vm3 = vcmp.eq.f32.partialorder %v1149_v22, 8.507059e+37 }
 0x3ca   : > { %v1462_v18 = vpop.eup %1461 }
 0x3cb   : > { %v1141_v16 = vmul.f32 %v1462_v18, %v1094_v48  ;;  %vm1146_vm0 = vweird.f32 %v1462_v18 }
 0x3cc   : > { %vm1147_vm2 = vmor %vm1145_vm1, %vm1146_vm0 }
 0x3cd   : > { %v1142_v44 = vsub.f32 1.0, %v1141_v16 }
 0x3cf   : > { %v1143_v23 = vmul.f32 %v1462_v18, %v1142_v44 }
 0x3d1   : > { %v1144_v30 = vadd.f32 %v1462_v18, %v1143_v23 }
 0x3d3   : > { %v1148_v28 = vsel %vm1147_vm2, %v1462_v18, %v1144_v30 }
 0x3d4   : > { %v1153_v36 = vsel %vm1150_vm3, %v1152_v31, %v1148_v28 }
 0x3d5   : > { %v1179_v46 = vmul.f32 %v1153_v36, %v2275_v53  ;;  %v1180_v45 = vmul.f32 %v1153_v36, %v2271_v57  ;;  %v1181_v14 = vmul.f32 %v1153_v36, %v2283_v33  ;;  %v1182_v47 = vmul.f32 %v1153_v36, %v2287_v56 }
 0x3d6   : > { %v1183_v37 = vmul.f32 %v1153_v36, %v2297_v25  ;;  %v1184_v60 = vmul.f32 %v1153_v36, %v2300_v49  ;;  %v1185_v57 = vmul.f32 %v1153_v36, %v2305_v20  ;;  %v1186_v53 = vmul.f32 %v1153_v36, %v2312_v38 }
 0x3d7   : > { %1211 = vst [vmem:[%s2182_s30 + $0xc0] sm:$0xff] %v1179_v46 }
 0x3d8   : > { %1212 = vst [vmem:[%s2182_s30 + $0xc8] sm:$0xff] %v1180_v45 }
 0x3d9   : > { %1213 = vst [vmem:[%s2182_s30 + $0xd0] sm:$0xff] %v1181_v14 }
 0x3da   : > { %1214 = vst [vmem:[%s2182_s30 + $0xd8] sm:$0xff] %v1182_v47 }
 0x3db   : > { %1215 = vst [vmem:[%s2182_s30 + $0xe0] sm:$0xff] %v1183_v37 }
 0x3dc   : > { %1216 = vst [vmem:[%s2182_s30 + $0xe8] sm:$0xff] %v1184_v60 }
 0x3dd   : > { %1217 = vst [vmem:[%s2182_s30 + $0xf0] sm:$0xff] %v1185_v57 }
 0x3de   : > { %1218 = vst [vmem:[%s2182_s30 + $0xf8] sm:$0xff] %v1186_v53 }
 0x3df   : > { %1554 = shalt.err (!%p1551_p8)
}
 0x3e0   : > { %s1602_s0 = smov 128   ;;  %s1603_s13 = smov 8  }
 0x3e1   : > { %1358 = dma.vmem_to_hbm [thread:$0]  (%p1681_p11), %s1234_s19, 4096, %s1236_s6, %s1220_s10, %s1602_s0, %s1602_s0, %s1603_s13  }
 0x3e2 PF: > { %s1250_s22 = sand.u32 1, %s1585_s15   ;;  %p2397_p9 = scmp.ge.s32.totalorder %s1597_s18, 2 }
 0x3e3   : > { %s1251_s23 = scalar_lea.sflag [#allocation4], %s1250_s22 }
 0x3e4   : > { %p1369_p10 = pnand %p2397_p9, %p1685_p12 }
 0x3e6   : > { %p1370_p1 = pneg %p1369_p10 }
 0x3e8   : > { %1580 = dma.done.wait (%p1370_p1), %s1251_s23, 4096  }
 0x3e9   : > { %1582 = vsyncadd (%p1370_p1), %s1251_s23, 4294963200  ;;  %p18_p2 = scmp.ge.s32.totalorder %s1654_s21, 4   ;;  %s2398_s15 = smov %s1589_s16 }
 0x3ea   : > { %s2399_s16 = smov %s1593_s17  ;;  %s2400_s17 = smov %s1666_s24 }
 0x3eb   : > { %s2401_s18 = smov %s1654_s21  ;;  %20 = sbr.rel (!%p18_p2) target bundleno = 8 (0x8), region = 86 }
 0x3f0   :  { %1257 = vsyncpa [#allocation3], 1 }
 0x3f1   :  { %1259 = vsyncpa [#allocation3 + $0x1], 1 }
 0x3f2   :  { %1260 = vsyncpa [#allocation4], 1 }
 0x3f3   :  { %1262 = vsyncpa [#allocation4 + $0x1], 1 }
 0x3f4   :  { %1263 = vsyncpa [#allocation5], 1 }
 0x3f5   :  { %1265 = vsyncpa [#allocation5 + $0x1], 1 }

</bundles_post_ra>
